<compile_context>
chip_gen: v5e
topology: v5e:2x2
jax: 0.10.0
libtpu: 0.0.40
codegen_flags: <defaults>
</compile_context>

<pallas_src>
import math

import jax
import jax.numpy as jnp
from jax import lax
from jax.experimental import pallas as pl
from jax.experimental.pallas import tpu as pltpu


def _choose_row_tile(B, S, max_rows=256):
    """Pick a row-tile size T such that T | B*S and (T | S or S | T)."""
    N = B * S
    if N <= max_rows:
        return N
    if S % 8 == 0:
        if S <= max_rows:
            k = 1
            while (k * 2) * S <= max_rows and B % (k * 2) == 0:
                k *= 2
            return k * S
        # S > max_rows: largest power-of-two tile <= max_rows dividing S (>=8 exists)
        t = max_rows
        while t >= 8:
            if S % t == 0:
                return t
            t //= 2
    # TODO(synk): S not a multiple of 8 and B*S large -> single full-array block;
    # a padded-S layout would be needed for big unaligned sequence lengths.
    return N


def _make_kernel(*, train, p, T, E):
    use_dropout = train and p > 0.0
    inv_keep = 1.0 / (1.0 - p) if (use_dropout and p < 1.0) else 1.0
    thresh = min(int(round(p * (2.0 ** 32))), 2 ** 32 - 1)

    def kernel(ids_ref, seed_ref, emb_hbm, pos_ref, out_ref, rows_vmem, sems):
        t = pl.program_id(0)
        base = t * T

        def row_copy(r, tok_index):
            return pltpu.make_async_copy(
                emb_hbm.at[pl.ds(tok_index, 1), :],
                rows_vmem.at[pl.ds(r, 1), :],
                sems.at[r],
            )

        # Gather: one async row DMA per token in this tile (HBM -> VMEM scratch).
        # Output writeback of the previous tile overlaps these DMAs via the
        # BlockSpec pipeline.
        if T <= 32:  # small tiles: fully unrolled (also the demo path)
            copies = [row_copy(r, ids_ref[base + r]) for r in range(T)]
            for c in copies:
                c.start()
            for c in copies:
                c.wait()
        else:
            def _start(r, carry):
                row_copy(r, ids_ref[base + r]).start()
                return carry

            lax.fori_loop(0, T, _start, 0)

            def _wait(r, carry):
                row_copy(r, 0).wait()  # wait only needs sem + byte count
                return carry

            lax.fori_loop(0, T, _wait, 0)

        x = rows_vmem[...].astype(jnp.float32) + pos_ref[...]

        if use_dropout:
            if p >= 1.0:
                x = jnp.zeros_like(x)
            else:
                # Counter-hash PRNG (murmur3-style finalizer) + integer threshold
                # compare: keep with prob (1 - p), scale kept values by 1/(1-p).
                # TODO(synk): RNG stream differs from torch.nn.Dropout.
                r_io = lax.broadcasted_iota(jnp.int32, (T, E), 0)
                c_io = lax.broadcasted_iota(jnp.int32, (T, E), 1)
                local = (r_io * E + c_io).astype(jnp.uint32)
                ctr = local + t.astype(jnp.uint32) * jnp.uint32(T * E)
                h = ctr ^ (seed_ref[0].astype(jnp.uint32) * jnp.uint32(0x9E3779B9))
                h = (h ^ (h >> 16)) * jnp.uint32(0x85EBCA6B)
                h = (h ^ (h >> 13)) * jnp.uint32(0xC2B2AE35)
                h = h ^ (h >> 16)
                keep = h >= jnp.uint32(thresh)
                x = jnp.where(keep, x * inv_keep, 0.0)

        out_ref[...] = x.astype(out_ref.dtype)

    return kernel


def embedding_with_position(token_ids, emb_table, pos_encoding, *,
                            dropout_p=0.1, train=False, seed=0):
    """token_ids: [B, S] int; emb_table: [V, E]; pos_encoding: [seq_max_len, E]."""
    B, S = token_ids.shape
    V, E = emb_table.shape
    N = B * S
    out_dtype = emb_table.dtype

    T = _choose_row_tile(B, S)
    num_tiles = N // T

    # Positional encoding presented so each (T, E) block is a plain BlockSpec stream
    # (row tiles never straddle a sequence boundary by construction of T).
    pos = pos_encoding[:S, :].astype(jnp.float32)
    if T >= S:                                  # T is a multiple of S
        pos_host = jnp.tile(pos, (T // S, 1))   # (T, E)
        reps = 1
    else:                                       # S is a multiple of T
        pos_host = pos                          # (S, E)
        reps = S // T

    # Clamp ids so a bad token id cannot become an out-of-bounds HBM DMA.
    ids_flat = jnp.clip(token_ids.reshape(N).astype(jnp.int32), 0, V - 1)
    seed_arr = jnp.array([seed], dtype=jnp.int32)

    kernel = _make_kernel(train=train, p=float(dropout_p), T=T, E=E)

    if reps > 1:
        pos_spec = pl.BlockSpec((T, E), lambda t, ids_p, seed_p: (t % reps, 0))
    else:
        pos_spec = pl.BlockSpec((T, E), lambda t, ids_p, seed_p: (0, 0))

    grid_spec = pltpu.PrefetchScalarGridSpec(
        num_scalar_prefetch=2,                   # (token ids, seed) -> SMEM
        grid=(num_tiles,),
        in_specs=[
            pl.BlockSpec(memory_space=pl.ANY),   # embedding table stays in HBM
            pos_spec,                            # streamed positional tiles
        ],
        out_specs=pl.BlockSpec((T, E), lambda t, ids_p, seed_p: (t, 0)),
        scratch_shapes=[
            pltpu.VMEM((T, E), emb_table.dtype),  # gathered rows
            pltpu.SemaphoreType.DMA((T,)),        # one DMA semaphore per row
        ],
    )

    out_flat = pl.pallas_call(
        kernel,
        grid_spec=grid_spec,
        out_shape=jax.ShapeDtypeStruct((N, E), out_dtype),
        compiler_params=pltpu.CompilerParams(
            dimension_semantics=("parallel",)),   # independent row tiles (v7x 2xTC)
    )(ids_flat, seed_arr, emb_table, pos_host)

    return out_flat.reshape(B, S, E)


def make_pos_encoding(seq_max_len, emb_size):
    position_idx = jnp.arange(0, seq_max_len, dtype=jnp.float32)[:, None]
    div = jnp.exp(-jnp.arange(0, emb_size, 2, dtype=jnp.float32)
                  * math.log(10000.0) / emb_size)
    fill = position_idx * div[None, :]
    pe = jnp.zeros((seq_max_len, emb_size), dtype=jnp.float32)
    pe = pe.at[:, 0::2].set(jnp.sin(fill))
    pe = pe.at[:, 1::2].set(jnp.cos(fill))
    return pe


if __name__ == "__main__":
    # small synthetic config
    vocab_size, emb_size = 32, 32
    batch, seq_len, seq_max_len = 2, 8, 16
    dropout_p = 0.1

    key = jax.random.PRNGKey(0)
    k_emb, k_ids = jax.random.split(key)

    emb_table = jax.random.normal(k_emb, (vocab_size, emb_size), dtype=jnp.float32)
    token_ids = jax.random.randint(k_ids, (batch, seq_len), 0, vocab_size,
                                   dtype=jnp.int32)
    pos_encoding = make_pos_encoding(seq_max_len, emb_size)

    # eval mode (dropout == identity): deterministic correctness check
    out = embedding_with_position(token_ids, emb_table, pos_encoding,
                                  dropout_p=dropout_p, train=False)
    out = jax.block_until_ready(out)

    ref = jnp.take(emb_table, token_ids, axis=0) + pos_encoding[None, :seq_len, :]
    assert out.shape == (batch, seq_len, emb_size)
    assert jnp.allclose(out, ref, atol=1e-5, rtol=1e-5), "mismatch vs reference"

    # training path (dropout): zeros some entries, scales the rest by 1/(1-p)
    out_train = embedding_with_position(token_ids, emb_table, pos_encoding,
                                        dropout_p=dropout_p, train=True, seed=1234)
    out_train = jax.block_until_ready(out_train)
    assert out_train.shape == (batch, seq_len, emb_size)
    assert int(jnp.sum(out_train == 0.0)) > 0
    kept_scaled = jnp.where(out_train != 0.0, out_train * (1.0 - dropout_p), 0.0)
    kept_ref = jnp.where(out_train != 0.0, ref, 0.0)
    assert jnp.allclose(kept_scaled, kept_ref, atol=1e-5, rtol=1e-5)

    print("KERNEL_OK")
</pallas_src>

<mosaic_0001>
module attributes {stable_mosaic.version = 11 : i64} {
  func.func @kernel(%arg0: i32, %arg1: memref<16xi32, #tpu.memory_space<smem>>, %arg2: memref<1xi32, #tpu.memory_space<smem>>, %arg3: memref<32x32xf32, #tpu.memory_space<any>>, %arg4: memref<16x32xf32, #tpu.memory_space<vmem>>, %arg5: memref<16x32xf32, #tpu.memory_space<vmem>>, %arg6: memref<16x32xf32, #tpu.memory_space<vmem>>, %arg7: memref<16x!tpu.dma_semaphore, #tpu.memory_space<semaphore_mem>>) attributes {dimension_semantics = [#tpu.dimension_semantics<parallel>], iteration_bounds = array<i64: 1>, scalar_prefetch = 2 : i64, scratch_operands = 2 : i64, tpu.core_type = #tpu.core_type<tc>, window_params = [{}, {pipeline_mode = #tpu.pipeline_mode<synchronous>, transform_indices = @transform_1, window_bounds = array<i64: 16, 32>}, {transform_indices = @transform_2, window_bounds = array<i64: 16, 32>}]} {
    %c16_i32 = arith.constant 16 : i32
    %0 = arith.muli %arg0, %c16_i32 : i32
    %c0_i32 = arith.constant 0 : i32
    %1 = arith.addi %0, %c0_i32 : i32
    %2 = arith.index_cast %1 : i32 to index
    %3 = memref.load %arg1[%2] : memref<16xi32, #tpu.memory_space<smem>>
    %c1_i32 = arith.constant 1 : i32
    %4 = arith.addi %0, %c1_i32 : i32
    %5 = arith.index_cast %4 : i32 to index
    %6 = memref.load %arg1[%5] : memref<16xi32, #tpu.memory_space<smem>>
    %c2_i32 = arith.constant 2 : i32
    %7 = arith.addi %0, %c2_i32 : i32
    %8 = arith.index_cast %7 : i32 to index
    %9 = memref.load %arg1[%8] : memref<16xi32, #tpu.memory_space<smem>>
    %c3_i32 = arith.constant 3 : i32
    %10 = arith.addi %0, %c3_i32 : i32
    %11 = arith.index_cast %10 : i32 to index
    %12 = memref.load %arg1[%11] : memref<16xi32, #tpu.memory_space<smem>>
    %c4_i32 = arith.constant 4 : i32
    %13 = arith.addi %0, %c4_i32 : i32
    %14 = arith.index_cast %13 : i32 to index
    %15 = memref.load %arg1[%14] : memref<16xi32, #tpu.memory_space<smem>>
    %c5_i32 = arith.constant 5 : i32
    %16 = arith.addi %0, %c5_i32 : i32
    %17 = arith.index_cast %16 : i32 to index
    %18 = memref.load %arg1[%17] : memref<16xi32, #tpu.memory_space<smem>>
    %c6_i32 = arith.constant 6 : i32
    %19 = arith.addi %0, %c6_i32 : i32
    %20 = arith.index_cast %19 : i32 to index
    %21 = memref.load %arg1[%20] : memref<16xi32, #tpu.memory_space<smem>>
    %c7_i32 = arith.constant 7 : i32
    %22 = arith.addi %0, %c7_i32 : i32
    %23 = arith.index_cast %22 : i32 to index
    %24 = memref.load %arg1[%23] : memref<16xi32, #tpu.memory_space<smem>>
    %c8_i32 = arith.constant 8 : i32
    %25 = arith.addi %0, %c8_i32 : i32
    %26 = arith.index_cast %25 : i32 to index
    %27 = memref.load %arg1[%26] : memref<16xi32, #tpu.memory_space<smem>>
    %c9_i32 = arith.constant 9 : i32
    %28 = arith.addi %0, %c9_i32 : i32
    %29 = arith.index_cast %28 : i32 to index
    %30 = memref.load %arg1[%29] : memref<16xi32, #tpu.memory_space<smem>>
    %c10_i32 = arith.constant 10 : i32
    %31 = arith.addi %0, %c10_i32 : i32
    %32 = arith.index_cast %31 : i32 to index
    %33 = memref.load %arg1[%32] : memref<16xi32, #tpu.memory_space<smem>>
    %c11_i32 = arith.constant 11 : i32
    %34 = arith.addi %0, %c11_i32 : i32
    %35 = arith.index_cast %34 : i32 to index
    %36 = memref.load %arg1[%35] : memref<16xi32, #tpu.memory_space<smem>>
    %c12_i32 = arith.constant 12 : i32
    %37 = arith.addi %0, %c12_i32 : i32
    %38 = arith.index_cast %37 : i32 to index
    %39 = memref.load %arg1[%38] : memref<16xi32, #tpu.memory_space<smem>>
    %c13_i32 = arith.constant 13 : i32
    %40 = arith.addi %0, %c13_i32 : i32
    %41 = arith.index_cast %40 : i32 to index
    %42 = memref.load %arg1[%41] : memref<16xi32, #tpu.memory_space<smem>>
    %c14_i32 = arith.constant 14 : i32
    %43 = arith.addi %0, %c14_i32 : i32
    %44 = arith.index_cast %43 : i32 to index
    %45 = memref.load %arg1[%44] : memref<16xi32, #tpu.memory_space<smem>>
    %c15_i32 = arith.constant 15 : i32
    %46 = arith.addi %0, %c15_i32 : i32
    %47 = arith.index_cast %46 : i32 to index
    %48 = memref.load %arg1[%47] : memref<16xi32, #tpu.memory_space<smem>>
    %c0_i32_0 = arith.constant 0 : i32
    %c0_i32_1 = arith.constant 0 : i32
    %49 = tpu.memref_slice %arg3[%3, %c0_i32_1] : memref<32x32xf32, #tpu.memory_space<any>> -> memref<1x32xf32, #tpu.memory_space<any>>
    %c0_i32_2 = arith.constant 0 : i32
    %c0_i32_3 = arith.constant 0 : i32
    %50 = tpu.memref_slice %arg6[%c0_i32_2, %c0_i32_3] : memref<16x32xf32, #tpu.memory_space<vmem>> -> memref<1x32xf32, #tpu.memory_space<vmem>>
    %51 = tpu.memref_slice %arg7[%c0_i32_0] : memref<16x!tpu.dma_semaphore, #tpu.memory_space<semaphore_mem>> -> memref<1x!tpu.dma_semaphore, #tpu.memory_space<semaphore_mem>>
    %52 = tpu.memref_squeeze %51 : memref<1x!tpu.dma_semaphore, #tpu.memory_space<semaphore_mem>> -> memref<!tpu.dma_semaphore, #tpu.memory_space<semaphore_mem>>
    tpu.enqueue_dma source(%49 : memref<1x32xf32, #tpu.memory_space<any>>) target(%50 : memref<1x32xf32, #tpu.memory_space<vmem>>) target_semaphore(%52 : memref<!tpu.dma_semaphore, #tpu.memory_space<semaphore_mem>>)
    %c1_i32_4 = arith.constant 1 : i32
    %c0_i32_5 = arith.constant 0 : i32
    %53 = tpu.memref_slice %arg3[%6, %c0_i32_5] : memref<32x32xf32, #tpu.memory_space<any>> -> memref<1x32xf32, #tpu.memory_space<any>>
    %c1_i32_6 = arith.constant 1 : i32
    %c0_i32_7 = arith.constant 0 : i32
    %54 = tpu.memref_slice %arg6[%c1_i32_6, %c0_i32_7] : memref<16x32xf32, #tpu.memory_space<vmem>> -> memref<1x32xf32, #tpu.memory_space<vmem>>
    %55 = tpu.memref_slice %arg7[%c1_i32_4] : memref<16x!tpu.dma_semaphore, #tpu.memory_space<semaphore_mem>> -> memref<1x!tpu.dma_semaphore, #tpu.memory_space<semaphore_mem>>
    %56 = tpu.memref_squeeze %55 : memref<1x!tpu.dma_semaphore, #tpu.memory_space<semaphore_mem>> -> memref<!tpu.dma_semaphore, #tpu.memory_space<semaphore_mem>>
    tpu.enqueue_dma source(%53 : memref<1x32xf32, #tpu.memory_space<any>>) target(%54 : memref<1x32xf32, #tpu.memory_space<vmem>>) target_semaphore(%56 : memref<!tpu.dma_semaphore, #tpu.memory_space<semaphore_mem>>)
    %c2_i32_8 = arith.constant 2 : i32
    %c0_i32_9 = arith.constant 0 : i32
    %57 = tpu.memref_slice %arg3[%9, %c0_i32_9] : memref<32x32xf32, #tpu.memory_space<any>> -> memref<1x32xf32, #tpu.memory_space<any>>
    %c2_i32_10 = arith.constant 2 : i32
    %c0_i32_11 = arith.constant 0 : i32
    %58 = tpu.memref_slice %arg6[%c2_i32_10, %c0_i32_11] : memref<16x32xf32, #tpu.memory_space<vmem>> -> memref<1x32xf32, #tpu.memory_space<vmem>>
    %59 = tpu.memref_slice %arg7[%c2_i32_8] : memref<16x!tpu.dma_semaphore, #tpu.memory_space<semaphore_mem>> -> memref<1x!tpu.dma_semaphore, #tpu.memory_space<semaphore_mem>>
    %60 = tpu.memref_squeeze %59 : memref<1x!tpu.dma_semaphore, #tpu.memory_space<semaphore_mem>> -> memref<!tpu.dma_semaphore, #tpu.memory_space<semaphore_mem>>
    tpu.enqueue_dma source(%57 : memref<1x32xf32, #tpu.memory_space<any>>) target(%58 : memref<1x32xf32, #tpu.memory_space<vmem>>) target_semaphore(%60 : memref<!tpu.dma_semaphore, #tpu.memory_space<semaphore_mem>>)
    %c3_i32_12 = arith.constant 3 : i32
    %c0_i32_13 = arith.constant 0 : i32
    %61 = tpu.memref_slice %arg3[%12, %c0_i32_13] : memref<32x32xf32, #tpu.memory_space<any>> -> memref<1x32xf32, #tpu.memory_space<any>>
    %c3_i32_14 = arith.constant 3 : i32
    %c0_i32_15 = arith.constant 0 : i32
    %62 = tpu.memref_slice %arg6[%c3_i32_14, %c0_i32_15] : memref<16x32xf32, #tpu.memory_space<vmem>> -> memref<1x32xf32, #tpu.memory_space<vmem>>
    %63 = tpu.memref_slice %arg7[%c3_i32_12] : memref<16x!tpu.dma_semaphore, #tpu.memory_space<semaphore_mem>> -> memref<1x!tpu.dma_semaphore, #tpu.memory_space<semaphore_mem>>
    %64 = tpu.memref_squeeze %63 : memref<1x!tpu.dma_semaphore, #tpu.memory_space<semaphore_mem>> -> memref<!tpu.dma_semaphore, #tpu.memory_space<semaphore_mem>>
    tpu.enqueue_dma source(%61 : memref<1x32xf32, #tpu.memory_space<any>>) target(%62 : memref<1x32xf32, #tpu.memory_space<vmem>>) target_semaphore(%64 : memref<!tpu.dma_semaphore, #tpu.memory_space<semaphore_mem>>)
    %c4_i32_16 = arith.constant 4 : i32
    %c0_i32_17 = arith.constant 0 : i32
    %65 = tpu.memref_slice %arg3[%15, %c0_i32_17] : memref<32x32xf32, #tpu.memory_space<any>> -> memref<1x32xf32, #tpu.memory_space<any>>
    %c4_i32_18 = arith.constant 4 : i32
    %c0_i32_19 = arith.constant 0 : i32
    %66 = tpu.memref_slice %arg6[%c4_i32_18, %c0_i32_19] : memref<16x32xf32, #tpu.memory_space<vmem>> -> memref<1x32xf32, #tpu.memory_space<vmem>>
    %67 = tpu.memref_slice %arg7[%c4_i32_16] : memref<16x!tpu.dma_semaphore, #tpu.memory_space<semaphore_mem>> -> memref<1x!tpu.dma_semaphore, #tpu.memory_space<semaphore_mem>>
    %68 = tpu.memref_squeeze %67 : memref<1x!tpu.dma_semaphore, #tpu.memory_space<semaphore_mem>> -> memref<!tpu.dma_semaphore, #tpu.memory_space<semaphore_mem>>
    tpu.enqueue_dma source(%65 : memref<1x32xf32, #tpu.memory_space<any>>) target(%66 : memref<1x32xf32, #tpu.memory_space<vmem>>) target_semaphore(%68 : memref<!tpu.dma_semaphore, #tpu.memory_space<semaphore_mem>>)
    %c5_i32_20 = arith.constant 5 : i32
    %c0_i32_21 = arith.constant 0 : i32
    %69 = tpu.memref_slice %arg3[%18, %c0_i32_21] : memref<32x32xf32, #tpu.memory_space<any>> -> memref<1x32xf32, #tpu.memory_space<any>>
    %c5_i32_22 = arith.constant 5 : i32
    %c0_i32_23 = arith.constant 0 : i32
    %70 = tpu.memref_slice %arg6[%c5_i32_22, %c0_i32_23] : memref<16x32xf32, #tpu.memory_space<vmem>> -> memref<1x32xf32, #tpu.memory_space<vmem>>
    %71 = tpu.memref_slice %arg7[%c5_i32_20] : memref<16x!tpu.dma_semaphore, #tpu.memory_space<semaphore_mem>> -> memref<1x!tpu.dma_semaphore, #tpu.memory_space<semaphore_mem>>
    %72 = tpu.memref_squeeze %71 : memref<1x!tpu.dma_semaphore, #tpu.memory_space<semaphore_mem>> -> memref<!tpu.dma_semaphore, #tpu.memory_space<semaphore_mem>>
    tpu.enqueue_dma source(%69 : memref<1x32xf32, #tpu.memory_space<any>>) target(%70 : memref<1x32xf32, #tpu.memory_space<vmem>>) target_semaphore(%72 : memref<!tpu.dma_semaphore, #tpu.memory_space<semaphore_mem>>)
    %c6_i32_24 = arith.constant 6 : i32
    %c0_i32_25 = arith.constant 0 : i32
    %73 = tpu.memref_slice %arg3[%21, %c0_i32_25] : memref<32x32xf32, #tpu.memory_space<any>> -> memref<1x32xf32, #tpu.memory_space<any>>
    %c6_i32_26 = arith.constant 6 : i32
    %c0_i32_27 = arith.constant 0 : i32
    %74 = tpu.memref_slice %arg6[%c6_i32_26, %c0_i32_27] : memref<16x32xf32, #tpu.memory_space<vmem>> -> memref<1x32xf32, #tpu.memory_space<vmem>>
    %75 = tpu.memref_slice %arg7[%c6_i32_24] : memref<16x!tpu.dma_semaphore, #tpu.memory_space<semaphore_mem>> -> memref<1x!tpu.dma_semaphore, #tpu.memory_space<semaphore_mem>>
    %76 = tpu.memref_squeeze %75 : memref<1x!tpu.dma_semaphore, #tpu.memory_space<semaphore_mem>> -> memref<!tpu.dma_semaphore, #tpu.memory_space<semaphore_mem>>
    tpu.enqueue_dma source(%73 : memref<1x32xf32, #tpu.memory_space<any>>) target(%74 : memref<1x32xf32, #tpu.memory_space<vmem>>) target_semaphore(%76 : memref<!tpu.dma_semaphore, #tpu.memory_space<semaphore_mem>>)
    %c7_i32_28 = arith.constant 7 : i32
    %c0_i32_29 = arith.constant 0 : i32
    %77 = tpu.memref_slice %arg3[%24, %c0_i32_29] : memref<32x32xf32, #tpu.memory_space<any>> -> memref<1x32xf32, #tpu.memory_space<any>>
    %c7_i32_30 = arith.constant 7 : i32
    %c0_i32_31 = arith.constant 0 : i32
    %78 = tpu.memref_slice %arg6[%c7_i32_30, %c0_i32_31] : memref<16x32xf32, #tpu.memory_space<vmem>> -> memref<1x32xf32, #tpu.memory_space<vmem>>
    %79 = tpu.memref_slice %arg7[%c7_i32_28] : memref<16x!tpu.dma_semaphore, #tpu.memory_space<semaphore_mem>> -> memref<1x!tpu.dma_semaphore, #tpu.memory_space<semaphore_mem>>
    %80 = tpu.memref_squeeze %79 : memref<1x!tpu.dma_semaphore, #tpu.memory_space<semaphore_mem>> -> memref<!tpu.dma_semaphore, #tpu.memory_space<semaphore_mem>>
    tpu.enqueue_dma source(%77 : memref<1x32xf32, #tpu.memory_space<any>>) target(%78 : memref<1x32xf32, #tpu.memory_space<vmem>>) target_semaphore(%80 : memref<!tpu.dma_semaphore, #tpu.memory_space<semaphore_mem>>)
    %c8_i32_32 = arith.constant 8 : i32
    %c0_i32_33 = arith.constant 0 : i32
    %81 = tpu.memref_slice %arg3[%27, %c0_i32_33] : memref<32x32xf32, #tpu.memory_space<any>> -> memref<1x32xf32, #tpu.memory_space<any>>
    %c8_i32_34 = arith.constant 8 : i32
    %c0_i32_35 = arith.constant 0 : i32
    %82 = tpu.memref_slice %arg6[%c8_i32_34, %c0_i32_35] : memref<16x32xf32, #tpu.memory_space<vmem>> -> memref<1x32xf32, #tpu.memory_space<vmem>>
    %83 = tpu.memref_slice %arg7[%c8_i32_32] : memref<16x!tpu.dma_semaphore, #tpu.memory_space<semaphore_mem>> -> memref<1x!tpu.dma_semaphore, #tpu.memory_space<semaphore_mem>>
    %84 = tpu.memref_squeeze %83 : memref<1x!tpu.dma_semaphore, #tpu.memory_space<semaphore_mem>> -> memref<!tpu.dma_semaphore, #tpu.memory_space<semaphore_mem>>
    tpu.enqueue_dma source(%81 : memref<1x32xf32, #tpu.memory_space<any>>) target(%82 : memref<1x32xf32, #tpu.memory_space<vmem>>) target_semaphore(%84 : memref<!tpu.dma_semaphore, #tpu.memory_space<semaphore_mem>>)
    %c9_i32_36 = arith.constant 9 : i32
    %c0_i32_37 = arith.constant 0 : i32
    %85 = tpu.memref_slice %arg3[%30, %c0_i32_37] : memref<32x32xf32, #tpu.memory_space<any>> -> memref<1x32xf32, #tpu.memory_space<any>>
    %c9_i32_38 = arith.constant 9 : i32
    %c0_i32_39 = arith.constant 0 : i32
    %86 = tpu.memref_slice %arg6[%c9_i32_38, %c0_i32_39] : memref<16x32xf32, #tpu.memory_space<vmem>> -> memref<1x32xf32, #tpu.memory_space<vmem>>
    %87 = tpu.memref_slice %arg7[%c9_i32_36] : memref<16x!tpu.dma_semaphore, #tpu.memory_space<semaphore_mem>> -> memref<1x!tpu.dma_semaphore, #tpu.memory_space<semaphore_mem>>
    %88 = tpu.memref_squeeze %87 : memref<1x!tpu.dma_semaphore, #tpu.memory_space<semaphore_mem>> -> memref<!tpu.dma_semaphore, #tpu.memory_space<semaphore_mem>>
    tpu.enqueue_dma source(%85 : memref<1x32xf32, #tpu.memory_space<any>>) target(%86 : memref<1x32xf32, #tpu.memory_space<vmem>>) target_semaphore(%88 : memref<!tpu.dma_semaphore, #tpu.memory_space<semaphore_mem>>)
    %c10_i32_40 = arith.constant 10 : i32
    %c0_i32_41 = arith.constant 0 : i32
    %89 = tpu.memref_slice %arg3[%33, %c0_i32_41] : memref<32x32xf32, #tpu.memory_space<any>> -> memref<1x32xf32, #tpu.memory_space<any>>
    %c10_i32_42 = arith.constant 10 : i32
    %c0_i32_43 = arith.constant 0 : i32
    %90 = tpu.memref_slice %arg6[%c10_i32_42, %c0_i32_43] : memref<16x32xf32, #tpu.memory_space<vmem>> -> memref<1x32xf32, #tpu.memory_space<vmem>>
    %91 = tpu.memref_slice %arg7[%c10_i32_40] : memref<16x!tpu.dma_semaphore, #tpu.memory_space<semaphore_mem>> -> memref<1x!tpu.dma_semaphore, #tpu.memory_space<semaphore_mem>>
    %92 = tpu.memref_squeeze %91 : memref<1x!tpu.dma_semaphore, #tpu.memory_space<semaphore_mem>> -> memref<!tpu.dma_semaphore, #tpu.memory_space<semaphore_mem>>
    tpu.enqueue_dma source(%89 : memref<1x32xf32, #tpu.memory_space<any>>) target(%90 : memref<1x32xf32, #tpu.memory_space<vmem>>) target_semaphore(%92 : memref<!tpu.dma_semaphore, #tpu.memory_space<semaphore_mem>>)
    %c11_i32_44 = arith.constant 11 : i32
    %c0_i32_45 = arith.constant 0 : i32
    %93 = tpu.memref_slice %arg3[%36, %c0_i32_45] : memref<32x32xf32, #tpu.memory_space<any>> -> memref<1x32xf32, #tpu.memory_space<any>>
    %c11_i32_46 = arith.constant 11 : i32
    %c0_i32_47 = arith.constant 0 : i32
    %94 = tpu.memref_slice %arg6[%c11_i32_46, %c0_i32_47] : memref<16x32xf32, #tpu.memory_space<vmem>> -> memref<1x32xf32, #tpu.memory_space<vmem>>
    %95 = tpu.memref_slice %arg7[%c11_i32_44] : memref<16x!tpu.dma_semaphore, #tpu.memory_space<semaphore_mem>> -> memref<1x!tpu.dma_semaphore, #tpu.memory_space<semaphore_mem>>
    %96 = tpu.memref_squeeze %95 : memref<1x!tpu.dma_semaphore, #tpu.memory_space<semaphore_mem>> -> memref<!tpu.dma_semaphore, #tpu.memory_space<semaphore_mem>>
    tpu.enqueue_dma source(%93 : memref<1x32xf32, #tpu.memory_space<any>>) target(%94 : memref<1x32xf32, #tpu.memory_space<vmem>>) target_semaphore(%96 : memref<!tpu.dma_semaphore, #tpu.memory_space<semaphore_mem>>)
    %c12_i32_48 = arith.constant 12 : i32
    %c0_i32_49 = arith.constant 0 : i32
    %97 = tpu.memref_slice %arg3[%39, %c0_i32_49] : memref<32x32xf32, #tpu.memory_space<any>> -> memref<1x32xf32, #tpu.memory_space<any>>
    %c12_i32_50 = arith.constant 12 : i32
    %c0_i32_51 = arith.constant 0 : i32
    %98 = tpu.memref_slice %arg6[%c12_i32_50, %c0_i32_51] : memref<16x32xf32, #tpu.memory_space<vmem>> -> memref<1x32xf32, #tpu.memory_space<vmem>>
    %99 = tpu.memref_slice %arg7[%c12_i32_48] : memref<16x!tpu.dma_semaphore, #tpu.memory_space<semaphore_mem>> -> memref<1x!tpu.dma_semaphore, #tpu.memory_space<semaphore_mem>>
    %100 = tpu.memref_squeeze %99 : memref<1x!tpu.dma_semaphore, #tpu.memory_space<semaphore_mem>> -> memref<!tpu.dma_semaphore, #tpu.memory_space<semaphore_mem>>
    tpu.enqueue_dma source(%97 : memref<1x32xf32, #tpu.memory_space<any>>) target(%98 : memref<1x32xf32, #tpu.memory_space<vmem>>) target_semaphore(%100 : memref<!tpu.dma_semaphore, #tpu.memory_space<semaphore_mem>>)
    %c13_i32_52 = arith.constant 13 : i32
    %c0_i32_53 = arith.constant 0 : i32
    %101 = tpu.memref_slice %arg3[%42, %c0_i32_53] : memref<32x32xf32, #tpu.memory_space<any>> -> memref<1x32xf32, #tpu.memory_space<any>>
    %c13_i32_54 = arith.constant 13 : i32
    %c0_i32_55 = arith.constant 0 : i32
    %102 = tpu.memref_slice %arg6[%c13_i32_54, %c0_i32_55] : memref<16x32xf32, #tpu.memory_space<vmem>> -> memref<1x32xf32, #tpu.memory_space<vmem>>
    %103 = tpu.memref_slice %arg7[%c13_i32_52] : memref<16x!tpu.dma_semaphore, #tpu.memory_space<semaphore_mem>> -> memref<1x!tpu.dma_semaphore, #tpu.memory_space<semaphore_mem>>
    %104 = tpu.memref_squeeze %103 : memref<1x!tpu.dma_semaphore, #tpu.memory_space<semaphore_mem>> -> memref<!tpu.dma_semaphore, #tpu.memory_space<semaphore_mem>>
    tpu.enqueue_dma source(%101 : memref<1x32xf32, #tpu.memory_space<any>>) target(%102 : memref<1x32xf32, #tpu.memory_space<vmem>>) target_semaphore(%104 : memref<!tpu.dma_semaphore, #tpu.memory_space<semaphore_mem>>)
    %c14_i32_56 = arith.constant 14 : i32
    %c0_i32_57 = arith.constant 0 : i32
    %105 = tpu.memref_slice %arg3[%45, %c0_i32_57] : memref<32x32xf32, #tpu.memory_space<any>> -> memref<1x32xf32, #tpu.memory_space<any>>
    %c14_i32_58 = arith.constant 14 : i32
    %c0_i32_59 = arith.constant 0 : i32
    %106 = tpu.memref_slice %arg6[%c14_i32_58, %c0_i32_59] : memref<16x32xf32, #tpu.memory_space<vmem>> -> memref<1x32xf32, #tpu.memory_space<vmem>>
    %107 = tpu.memref_slice %arg7[%c14_i32_56] : memref<16x!tpu.dma_semaphore, #tpu.memory_space<semaphore_mem>> -> memref<1x!tpu.dma_semaphore, #tpu.memory_space<semaphore_mem>>
    %108 = tpu.memref_squeeze %107 : memref<1x!tpu.dma_semaphore, #tpu.memory_space<semaphore_mem>> -> memref<!tpu.dma_semaphore, #tpu.memory_space<semaphore_mem>>
    tpu.enqueue_dma source(%105 : memref<1x32xf32, #tpu.memory_space<any>>) target(%106 : memref<1x32xf32, #tpu.memory_space<vmem>>) target_semaphore(%108 : memref<!tpu.dma_semaphore, #tpu.memory_space<semaphore_mem>>)
    %c15_i32_60 = arith.constant 15 : i32
    %c0_i32_61 = arith.constant 0 : i32
    %109 = tpu.memref_slice %arg3[%48, %c0_i32_61] : memref<32x32xf32, #tpu.memory_space<any>> -> memref<1x32xf32, #tpu.memory_space<any>>
    %c15_i32_62 = arith.constant 15 : i32
    %c0_i32_63 = arith.constant 0 : i32
    %110 = tpu.memref_slice %arg6[%c15_i32_62, %c0_i32_63] : memref<16x32xf32, #tpu.memory_space<vmem>> -> memref<1x32xf32, #tpu.memory_space<vmem>>
    %111 = tpu.memref_slice %arg7[%c15_i32_60] : memref<16x!tpu.dma_semaphore, #tpu.memory_space<semaphore_mem>> -> memref<1x!tpu.dma_semaphore, #tpu.memory_space<semaphore_mem>>
    %112 = tpu.memref_squeeze %111 : memref<1x!tpu.dma_semaphore, #tpu.memory_space<semaphore_mem>> -> memref<!tpu.dma_semaphore, #tpu.memory_space<semaphore_mem>>
    tpu.enqueue_dma source(%109 : memref<1x32xf32, #tpu.memory_space<any>>) target(%110 : memref<1x32xf32, #tpu.memory_space<vmem>>) target_semaphore(%112 : memref<!tpu.dma_semaphore, #tpu.memory_space<semaphore_mem>>)
    %c0_i32_64 = arith.constant 0 : i32
    %c0_i32_65 = arith.constant 0 : i32
    %113 = tpu.memref_slice %arg3[%3, %c0_i32_65] : memref<32x32xf32, #tpu.memory_space<any>> -> memref<1x32xf32, #tpu.memory_space<any>>
    %c0_i32_66 = arith.constant 0 : i32
    %c0_i32_67 = arith.constant 0 : i32
    %114 = tpu.memref_slice %arg6[%c0_i32_66, %c0_i32_67] : memref<16x32xf32, #tpu.memory_space<vmem>> -> memref<1x32xf32, #tpu.memory_space<vmem>>
    %115 = tpu.memref_slice %arg7[%c0_i32_64] : memref<16x!tpu.dma_semaphore, #tpu.memory_space<semaphore_mem>> -> memref<1x!tpu.dma_semaphore, #tpu.memory_space<semaphore_mem>>
    %116 = tpu.memref_squeeze %115 : memref<1x!tpu.dma_semaphore, #tpu.memory_space<semaphore_mem>> -> memref<!tpu.dma_semaphore, #tpu.memory_space<semaphore_mem>>
    tpu.wait_dma2 semaphore(%116 : memref<!tpu.dma_semaphore, #tpu.memory_space<semaphore_mem>>) src(%113 : memref<1x32xf32, #tpu.memory_space<any>>) dst(%114 : memref<1x32xf32, #tpu.memory_space<vmem>>)
    %c1_i32_68 = arith.constant 1 : i32
    %c0_i32_69 = arith.constant 0 : i32
    %117 = tpu.memref_slice %arg3[%6, %c0_i32_69] : memref<32x32xf32, #tpu.memory_space<any>> -> memref<1x32xf32, #tpu.memory_space<any>>
    %c1_i32_70 = arith.constant 1 : i32
    %c0_i32_71 = arith.constant 0 : i32
    %118 = tpu.memref_slice %arg6[%c1_i32_70, %c0_i32_71] : memref<16x32xf32, #tpu.memory_space<vmem>> -> memref<1x32xf32, #tpu.memory_space<vmem>>
    %119 = tpu.memref_slice %arg7[%c1_i32_68] : memref<16x!tpu.dma_semaphore, #tpu.memory_space<semaphore_mem>> -> memref<1x!tpu.dma_semaphore, #tpu.memory_space<semaphore_mem>>
    %120 = tpu.memref_squeeze %119 : memref<1x!tpu.dma_semaphore, #tpu.memory_space<semaphore_mem>> -> memref<!tpu.dma_semaphore, #tpu.memory_space<semaphore_mem>>
    tpu.wait_dma2 semaphore(%120 : memref<!tpu.dma_semaphore, #tpu.memory_space<semaphore_mem>>) src(%117 : memref<1x32xf32, #tpu.memory_space<any>>) dst(%118 : memref<1x32xf32, #tpu.memory_space<vmem>>)
    %c2_i32_72 = arith.constant 2 : i32
    %c0_i32_73 = arith.constant 0 : i32
    %121 = tpu.memref_slice %arg3[%9, %c0_i32_73] : memref<32x32xf32, #tpu.memory_space<any>> -> memref<1x32xf32, #tpu.memory_space<any>>
    %c2_i32_74 = arith.constant 2 : i32
    %c0_i32_75 = arith.constant 0 : i32
    %122 = tpu.memref_slice %arg6[%c2_i32_74, %c0_i32_75] : memref<16x32xf32, #tpu.memory_space<vmem>> -> memref<1x32xf32, #tpu.memory_space<vmem>>
    %123 = tpu.memref_slice %arg7[%c2_i32_72] : memref<16x!tpu.dma_semaphore, #tpu.memory_space<semaphore_mem>> -> memref<1x!tpu.dma_semaphore, #tpu.memory_space<semaphore_mem>>
    %124 = tpu.memref_squeeze %123 : memref<1x!tpu.dma_semaphore, #tpu.memory_space<semaphore_mem>> -> memref<!tpu.dma_semaphore, #tpu.memory_space<semaphore_mem>>
    tpu.wait_dma2 semaphore(%124 : memref<!tpu.dma_semaphore, #tpu.memory_space<semaphore_mem>>) src(%121 : memref<1x32xf32, #tpu.memory_space<any>>) dst(%122 : memref<1x32xf32, #tpu.memory_space<vmem>>)
    %c3_i32_76 = arith.constant 3 : i32
    %c0_i32_77 = arith.constant 0 : i32
    %125 = tpu.memref_slice %arg3[%12, %c0_i32_77] : memref<32x32xf32, #tpu.memory_space<any>> -> memref<1x32xf32, #tpu.memory_space<any>>
    %c3_i32_78 = arith.constant 3 : i32
    %c0_i32_79 = arith.constant 0 : i32
    %126 = tpu.memref_slice %arg6[%c3_i32_78, %c0_i32_79] : memref<16x32xf32, #tpu.memory_space<vmem>> -> memref<1x32xf32, #tpu.memory_space<vmem>>
    %127 = tpu.memref_slice %arg7[%c3_i32_76] : memref<16x!tpu.dma_semaphore, #tpu.memory_space<semaphore_mem>> -> memref<1x!tpu.dma_semaphore, #tpu.memory_space<semaphore_mem>>
    %128 = tpu.memref_squeeze %127 : memref<1x!tpu.dma_semaphore, #tpu.memory_space<semaphore_mem>> -> memref<!tpu.dma_semaphore, #tpu.memory_space<semaphore_mem>>
    tpu.wait_dma2 semaphore(%128 : memref<!tpu.dma_semaphore, #tpu.memory_space<semaphore_mem>>) src(%125 : memref<1x32xf32, #tpu.memory_space<any>>) dst(%126 : memref<1x32xf32, #tpu.memory_space<vmem>>)
    %c4_i32_80 = arith.constant 4 : i32
    %c0_i32_81 = arith.constant 0 : i32
    %129 = tpu.memref_slice %arg3[%15, %c0_i32_81] : memref<32x32xf32, #tpu.memory_space<any>> -> memref<1x32xf32, #tpu.memory_space<any>>
    %c4_i32_82 = arith.constant 4 : i32
    %c0_i32_83 = arith.constant 0 : i32
    %130 = tpu.memref_slice %arg6[%c4_i32_82, %c0_i32_83] : memref<16x32xf32, #tpu.memory_space<vmem>> -> memref<1x32xf32, #tpu.memory_space<vmem>>
    %131 = tpu.memref_slice %arg7[%c4_i32_80] : memref<16x!tpu.dma_semaphore, #tpu.memory_space<semaphore_mem>> -> memref<1x!tpu.dma_semaphore, #tpu.memory_space<semaphore_mem>>
    %132 = tpu.memref_squeeze %131 : memref<1x!tpu.dma_semaphore, #tpu.memory_space<semaphore_mem>> -> memref<!tpu.dma_semaphore, #tpu.memory_space<semaphore_mem>>
    tpu.wait_dma2 semaphore(%132 : memref<!tpu.dma_semaphore, #tpu.memory_space<semaphore_mem>>) src(%129 : memref<1x32xf32, #tpu.memory_space<any>>) dst(%130 : memref<1x32xf32, #tpu.memory_space<vmem>>)
    %c5_i32_84 = arith.constant 5 : i32
    %c0_i32_85 = arith.constant 0 : i32
    %133 = tpu.memref_slice %arg3[%18, %c0_i32_85] : memref<32x32xf32, #tpu.memory_space<any>> -> memref<1x32xf32, #tpu.memory_space<any>>
    %c5_i32_86 = arith.constant 5 : i32
    %c0_i32_87 = arith.constant 0 : i32
    %134 = tpu.memref_slice %arg6[%c5_i32_86, %c0_i32_87] : memref<16x32xf32, #tpu.memory_space<vmem>> -> memref<1x32xf32, #tpu.memory_space<vmem>>
    %135 = tpu.memref_slice %arg7[%c5_i32_84] : memref<16x!tpu.dma_semaphore, #tpu.memory_space<semaphore_mem>> -> memref<1x!tpu.dma_semaphore, #tpu.memory_space<semaphore_mem>>
    %136 = tpu.memref_squeeze %135 : memref<1x!tpu.dma_semaphore, #tpu.memory_space<semaphore_mem>> -> memref<!tpu.dma_semaphore, #tpu.memory_space<semaphore_mem>>
    tpu.wait_dma2 semaphore(%136 : memref<!tpu.dma_semaphore, #tpu.memory_space<semaphore_mem>>) src(%133 : memref<1x32xf32, #tpu.memory_space<any>>) dst(%134 : memref<1x32xf32, #tpu.memory_space<vmem>>)
    %c6_i32_88 = arith.constant 6 : i32
    %c0_i32_89 = arith.constant 0 : i32
    %137 = tpu.memref_slice %arg3[%21, %c0_i32_89] : memref<32x32xf32, #tpu.memory_space<any>> -> memref<1x32xf32, #tpu.memory_space<any>>
    %c6_i32_90 = arith.constant 6 : i32
    %c0_i32_91 = arith.constant 0 : i32
    %138 = tpu.memref_slice %arg6[%c6_i32_90, %c0_i32_91] : memref<16x32xf32, #tpu.memory_space<vmem>> -> memref<1x32xf32, #tpu.memory_space<vmem>>
    %139 = tpu.memref_slice %arg7[%c6_i32_88] : memref<16x!tpu.dma_semaphore, #tpu.memory_space<semaphore_mem>> -> memref<1x!tpu.dma_semaphore, #tpu.memory_space<semaphore_mem>>
    %140 = tpu.memref_squeeze %139 : memref<1x!tpu.dma_semaphore, #tpu.memory_space<semaphore_mem>> -> memref<!tpu.dma_semaphore, #tpu.memory_space<semaphore_mem>>
    tpu.wait_dma2 semaphore(%140 : memref<!tpu.dma_semaphore, #tpu.memory_space<semaphore_mem>>) src(%137 : memref<1x32xf32, #tpu.memory_space<any>>) dst(%138 : memref<1x32xf32, #tpu.memory_space<vmem>>)
    %c7_i32_92 = arith.constant 7 : i32
    %c0_i32_93 = arith.constant 0 : i32
    %141 = tpu.memref_slice %arg3[%24, %c0_i32_93] : memref<32x32xf32, #tpu.memory_space<any>> -> memref<1x32xf32, #tpu.memory_space<any>>
    %c7_i32_94 = arith.constant 7 : i32
    %c0_i32_95 = arith.constant 0 : i32
    %142 = tpu.memref_slice %arg6[%c7_i32_94, %c0_i32_95] : memref<16x32xf32, #tpu.memory_space<vmem>> -> memref<1x32xf32, #tpu.memory_space<vmem>>
    %143 = tpu.memref_slice %arg7[%c7_i32_92] : memref<16x!tpu.dma_semaphore, #tpu.memory_space<semaphore_mem>> -> memref<1x!tpu.dma_semaphore, #tpu.memory_space<semaphore_mem>>
    %144 = tpu.memref_squeeze %143 : memref<1x!tpu.dma_semaphore, #tpu.memory_space<semaphore_mem>> -> memref<!tpu.dma_semaphore, #tpu.memory_space<semaphore_mem>>
    tpu.wait_dma2 semaphore(%144 : memref<!tpu.dma_semaphore, #tpu.memory_space<semaphore_mem>>) src(%141 : memref<1x32xf32, #tpu.memory_space<any>>) dst(%142 : memref<1x32xf32, #tpu.memory_space<vmem>>)
    %c8_i32_96 = arith.constant 8 : i32
    %c0_i32_97 = arith.constant 0 : i32
    %145 = tpu.memref_slice %arg3[%27, %c0_i32_97] : memref<32x32xf32, #tpu.memory_space<any>> -> memref<1x32xf32, #tpu.memory_space<any>>
    %c8_i32_98 = arith.constant 8 : i32
    %c0_i32_99 = arith.constant 0 : i32
    %146 = tpu.memref_slice %arg6[%c8_i32_98, %c0_i32_99] : memref<16x32xf32, #tpu.memory_space<vmem>> -> memref<1x32xf32, #tpu.memory_space<vmem>>
    %147 = tpu.memref_slice %arg7[%c8_i32_96] : memref<16x!tpu.dma_semaphore, #tpu.memory_space<semaphore_mem>> -> memref<1x!tpu.dma_semaphore, #tpu.memory_space<semaphore_mem>>
    %148 = tpu.memref_squeeze %147 : memref<1x!tpu.dma_semaphore, #tpu.memory_space<semaphore_mem>> -> memref<!tpu.dma_semaphore, #tpu.memory_space<semaphore_mem>>
    tpu.wait_dma2 semaphore(%148 : memref<!tpu.dma_semaphore, #tpu.memory_space<semaphore_mem>>) src(%145 : memref<1x32xf32, #tpu.memory_space<any>>) dst(%146 : memref<1x32xf32, #tpu.memory_space<vmem>>)
    %c9_i32_100 = arith.constant 9 : i32
    %c0_i32_101 = arith.constant 0 : i32
    %149 = tpu.memref_slice %arg3[%30, %c0_i32_101] : memref<32x32xf32, #tpu.memory_space<any>> -> memref<1x32xf32, #tpu.memory_space<any>>
    %c9_i32_102 = arith.constant 9 : i32
    %c0_i32_103 = arith.constant 0 : i32
    %150 = tpu.memref_slice %arg6[%c9_i32_102, %c0_i32_103] : memref<16x32xf32, #tpu.memory_space<vmem>> -> memref<1x32xf32, #tpu.memory_space<vmem>>
    %151 = tpu.memref_slice %arg7[%c9_i32_100] : memref<16x!tpu.dma_semaphore, #tpu.memory_space<semaphore_mem>> -> memref<1x!tpu.dma_semaphore, #tpu.memory_space<semaphore_mem>>
    %152 = tpu.memref_squeeze %151 : memref<1x!tpu.dma_semaphore, #tpu.memory_space<semaphore_mem>> -> memref<!tpu.dma_semaphore, #tpu.memory_space<semaphore_mem>>
    tpu.wait_dma2 semaphore(%152 : memref<!tpu.dma_semaphore, #tpu.memory_space<semaphore_mem>>) src(%149 : memref<1x32xf32, #tpu.memory_space<any>>) dst(%150 : memref<1x32xf32, #tpu.memory_space<vmem>>)
    %c10_i32_104 = arith.constant 10 : i32
    %c0_i32_105 = arith.constant 0 : i32
    %153 = tpu.memref_slice %arg3[%33, %c0_i32_105] : memref<32x32xf32, #tpu.memory_space<any>> -> memref<1x32xf32, #tpu.memory_space<any>>
    %c10_i32_106 = arith.constant 10 : i32
    %c0_i32_107 = arith.constant 0 : i32
    %154 = tpu.memref_slice %arg6[%c10_i32_106, %c0_i32_107] : memref<16x32xf32, #tpu.memory_space<vmem>> -> memref<1x32xf32, #tpu.memory_space<vmem>>
    %155 = tpu.memref_slice %arg7[%c10_i32_104] : memref<16x!tpu.dma_semaphore, #tpu.memory_space<semaphore_mem>> -> memref<1x!tpu.dma_semaphore, #tpu.memory_space<semaphore_mem>>
    %156 = tpu.memref_squeeze %155 : memref<1x!tpu.dma_semaphore, #tpu.memory_space<semaphore_mem>> -> memref<!tpu.dma_semaphore, #tpu.memory_space<semaphore_mem>>
    tpu.wait_dma2 semaphore(%156 : memref<!tpu.dma_semaphore, #tpu.memory_space<semaphore_mem>>) src(%153 : memref<1x32xf32, #tpu.memory_space<any>>) dst(%154 : memref<1x32xf32, #tpu.memory_space<vmem>>)
    %c11_i32_108 = arith.constant 11 : i32
    %c0_i32_109 = arith.constant 0 : i32
    %157 = tpu.memref_slice %arg3[%36, %c0_i32_109] : memref<32x32xf32, #tpu.memory_space<any>> -> memref<1x32xf32, #tpu.memory_space<any>>
    %c11_i32_110 = arith.constant 11 : i32
    %c0_i32_111 = arith.constant 0 : i32
    %158 = tpu.memref_slice %arg6[%c11_i32_110, %c0_i32_111] : memref<16x32xf32, #tpu.memory_space<vmem>> -> memref<1x32xf32, #tpu.memory_space<vmem>>
    %159 = tpu.memref_slice %arg7[%c11_i32_108] : memref<16x!tpu.dma_semaphore, #tpu.memory_space<semaphore_mem>> -> memref<1x!tpu.dma_semaphore, #tpu.memory_space<semaphore_mem>>
    %160 = tpu.memref_squeeze %159 : memref<1x!tpu.dma_semaphore, #tpu.memory_space<semaphore_mem>> -> memref<!tpu.dma_semaphore, #tpu.memory_space<semaphore_mem>>
    tpu.wait_dma2 semaphore(%160 : memref<!tpu.dma_semaphore, #tpu.memory_space<semaphore_mem>>) src(%157 : memref<1x32xf32, #tpu.memory_space<any>>) dst(%158 : memref<1x32xf32, #tpu.memory_space<vmem>>)
    %c12_i32_112 = arith.constant 12 : i32
    %c0_i32_113 = arith.constant 0 : i32
    %161 = tpu.memref_slice %arg3[%39, %c0_i32_113] : memref<32x32xf32, #tpu.memory_space<any>> -> memref<1x32xf32, #tpu.memory_space<any>>
    %c12_i32_114 = arith.constant 12 : i32
    %c0_i32_115 = arith.constant 0 : i32
    %162 = tpu.memref_slice %arg6[%c12_i32_114, %c0_i32_115] : memref<16x32xf32, #tpu.memory_space<vmem>> -> memref<1x32xf32, #tpu.memory_space<vmem>>
    %163 = tpu.memref_slice %arg7[%c12_i32_112] : memref<16x!tpu.dma_semaphore, #tpu.memory_space<semaphore_mem>> -> memref<1x!tpu.dma_semaphore, #tpu.memory_space<semaphore_mem>>
    %164 = tpu.memref_squeeze %163 : memref<1x!tpu.dma_semaphore, #tpu.memory_space<semaphore_mem>> -> memref<!tpu.dma_semaphore, #tpu.memory_space<semaphore_mem>>
    tpu.wait_dma2 semaphore(%164 : memref<!tpu.dma_semaphore, #tpu.memory_space<semaphore_mem>>) src(%161 : memref<1x32xf32, #tpu.memory_space<any>>) dst(%162 : memref<1x32xf32, #tpu.memory_space<vmem>>)
    %c13_i32_116 = arith.constant 13 : i32
    %c0_i32_117 = arith.constant 0 : i32
    %165 = tpu.memref_slice %arg3[%42, %c0_i32_117] : memref<32x32xf32, #tpu.memory_space<any>> -> memref<1x32xf32, #tpu.memory_space<any>>
    %c13_i32_118 = arith.constant 13 : i32
    %c0_i32_119 = arith.constant 0 : i32
    %166 = tpu.memref_slice %arg6[%c13_i32_118, %c0_i32_119] : memref<16x32xf32, #tpu.memory_space<vmem>> -> memref<1x32xf32, #tpu.memory_space<vmem>>
    %167 = tpu.memref_slice %arg7[%c13_i32_116] : memref<16x!tpu.dma_semaphore, #tpu.memory_space<semaphore_mem>> -> memref<1x!tpu.dma_semaphore, #tpu.memory_space<semaphore_mem>>
    %168 = tpu.memref_squeeze %167 : memref<1x!tpu.dma_semaphore, #tpu.memory_space<semaphore_mem>> -> memref<!tpu.dma_semaphore, #tpu.memory_space<semaphore_mem>>
    tpu.wait_dma2 semaphore(%168 : memref<!tpu.dma_semaphore, #tpu.memory_space<semaphore_mem>>) src(%165 : memref<1x32xf32, #tpu.memory_space<any>>) dst(%166 : memref<1x32xf32, #tpu.memory_space<vmem>>)
    %c14_i32_120 = arith.constant 14 : i32
    %c0_i32_121 = arith.constant 0 : i32
    %169 = tpu.memref_slice %arg3[%45, %c0_i32_121] : memref<32x32xf32, #tpu.memory_space<any>> -> memref<1x32xf32, #tpu.memory_space<any>>
    %c14_i32_122 = arith.constant 14 : i32
    %c0_i32_123 = arith.constant 0 : i32
    %170 = tpu.memref_slice %arg6[%c14_i32_122, %c0_i32_123] : memref<16x32xf32, #tpu.memory_space<vmem>> -> memref<1x32xf32, #tpu.memory_space<vmem>>
    %171 = tpu.memref_slice %arg7[%c14_i32_120] : memref<16x!tpu.dma_semaphore, #tpu.memory_space<semaphore_mem>> -> memref<1x!tpu.dma_semaphore, #tpu.memory_space<semaphore_mem>>
    %172 = tpu.memref_squeeze %171 : memref<1x!tpu.dma_semaphore, #tpu.memory_space<semaphore_mem>> -> memref<!tpu.dma_semaphore, #tpu.memory_space<semaphore_mem>>
    tpu.wait_dma2 semaphore(%172 : memref<!tpu.dma_semaphore, #tpu.memory_space<semaphore_mem>>) src(%169 : memref<1x32xf32, #tpu.memory_space<any>>) dst(%170 : memref<1x32xf32, #tpu.memory_space<vmem>>)
    %c15_i32_124 = arith.constant 15 : i32
    %c0_i32_125 = arith.constant 0 : i32
    %173 = tpu.memref_slice %arg3[%48, %c0_i32_125] : memref<32x32xf32, #tpu.memory_space<any>> -> memref<1x32xf32, #tpu.memory_space<any>>
    %c15_i32_126 = arith.constant 15 : i32
    %c0_i32_127 = arith.constant 0 : i32
    %174 = tpu.memref_slice %arg6[%c15_i32_126, %c0_i32_127] : memref<16x32xf32, #tpu.memory_space<vmem>> -> memref<1x32xf32, #tpu.memory_space<vmem>>
    %175 = tpu.memref_slice %arg7[%c15_i32_124] : memref<16x!tpu.dma_semaphore, #tpu.memory_space<semaphore_mem>> -> memref<1x!tpu.dma_semaphore, #tpu.memory_space<semaphore_mem>>
    %176 = tpu.memref_squeeze %175 : memref<1x!tpu.dma_semaphore, #tpu.memory_space<semaphore_mem>> -> memref<!tpu.dma_semaphore, #tpu.memory_space<semaphore_mem>>
    tpu.wait_dma2 semaphore(%176 : memref<!tpu.dma_semaphore, #tpu.memory_space<semaphore_mem>>) src(%173 : memref<1x32xf32, #tpu.memory_space<any>>) dst(%174 : memref<1x32xf32, #tpu.memory_space<vmem>>)
    %c0 = arith.constant 0 : index
    %c0_128 = arith.constant 0 : index
    %177 = vector.load %arg6[%c0, %c0_128] : memref<16x32xf32, #tpu.memory_space<vmem>>, vector<16x32xf32>
    %c0_129 = arith.constant 0 : index
    %c0_130 = arith.constant 0 : index
    %178 = vector.load %arg4[%c0_129, %c0_130] : memref<16x32xf32, #tpu.memory_space<vmem>>, vector<16x32xf32>
    %179 = arith.addf %177, %178 : vector<16x32xf32>
    %c0_131 = arith.constant 0 : index
    %c0_132 = arith.constant 0 : index
    %180 = vector.load %arg5[%c0_131, %c0_132] : memref<16x32xf32, #tpu.memory_space<vmem>>, vector<16x32xf32>
    tpu.vector_store %arg5[%c0_131, %c0_132], %179 {strides = array<i32>} : memref<16x32xf32, #tpu.memory_space<vmem>>, vector<16x32xf32>,
    return
  }
  func.func @transform_1(%arg0: i32, %arg1: memref<16xi32, #tpu.memory_space<smem>>, %arg2: memref<1xi32, #tpu.memory_space<smem>>) -> (i32, i32) {
    %c0_i32 = arith.constant 0 : i32
    %c0_i32_0 = arith.constant 0 : i32
    %c0_i32_1 = arith.constant 0 : i32
    return %c0_i32, %c0_i32_0 : i32, i32
  }
  func.func @transform_2(%arg0: i32, %arg1: memref<16xi32, #tpu.memory_space<smem>>, %arg2: memref<1xi32, #tpu.memory_space<smem>>) -> (i32, i32) {
    %c0_i32 = arith.constant 0 : i32
    %c0_i32_0 = arith.constant 0 : i32
    return %arg0, %c0_i32 : i32, i32
  }
}

</mosaic_0001>

<bundles_post_ra>
// kernel: tpu_custom_call.1
= control target key start
LH: loop header
LB: loop body
LE: loop exit
PB: predicated region body
PF: predicated region fallthrough
CT: control target
= control target key end

     0   :  { %s1045_s18 = smov [#allocation5]   ;;  %s1280_s0 = inlined_call_operand.vmem [shape: s32[16], index: 0, kind: input, shape index: {}]   ;;  %s1281_s1 = inlined_call_operand.<no memory space> [shape: s32[1], index: 1, kind: input, shape index: {}]   ;;  %s1282_s2 = inlined_call_operand.hbm [shape: f32[32,32], index: 2, kind: input, shape index: {}]   ;;  %s1283_s3 = inlined_call_operand.hbm [shape: f32[16,32], index: 3, kind: input, shape index: {}]   ;;  %s1284_s4 = inlined_call_operand.hbm [shape: f32[16,32], index: 4, kind: output, shape index: {}]  }
   0x1   :  { %s10_s17 = sshll.u32 %s1280_s0, 4  ;;  %s11_s17 = int_to_ptr.vmem [resolvable:$true] %s10_s17 }
   0x2   :  { %13 = dma.vmem_to_smem %s11_s17, 16, %s1045_s18, [#allocation4] }
   0x3   :  { %1007 = dma.done.wait [#allocation4], 16 }
   0x4   :  { %1008 = vsyncadd [#allocation4], 4294967280 }
   0x5   :  { %17 = sfence }
   0x6   :  { %18 = vsyncpa [#allocation8], 0 }
   0x7   :  { %19 = vsyncpa [#allocation9], 0  ;;  %s24_s20 = sshll.u32 %s1283_s3, 4  ;;  %s1046_s21 = smov [#allocation7]   ;;  %s25_s20 = int_to_ptr.hbm [resolvable:$true] %s24_s20 }
   0x8   :  { %s26_s22 = sshll.u32 %s1046_s21, 4  ;;  %s1047_s23 = smov 128   ;;  %s27_s22 = int_to_ptr.vmem [resolvable:$true] %s26_s22 }
   0x9   :  { %s1048_s24 = smov 8  }
   0xa   :  { %32 = dma.hbm_to_vmem [thread:$0]  %s25_s20, 256, %s27_s22, [#allocation8], %s1047_s23, %s1047_s23, %s1048_s24  }
   0xb   :  { %1009 = dma.done.wait [#allocation8], 256  }
   0xc   :  { %1010 = vsyncadd [#allocation8], 4294967040  ;;  %s38_s0 = sld [smem:[#allocation5]]  ;;  %s1049_s25 = smov [#allocation2]  }
   0xd   :  { %s1100_s26 = sshll.u32 %s1049_s25, 4  ;;  %s511_s27 = sld [smem:[#allocation5 + $0x1]]  ;;  %s80_s26 = int_to_ptr.vmem [resolvable:$true] %s1100_s26 }
   0xe   :  { %s1050_s3 = smov [#allocation2 + $0x1]   ;;  %s1105_s29 = sld [smem:[#allocation5 + $0x2]] }
   0xf   :  { %s1103_s28 = sshll.u32 %s1050_s3, 4  ;;  %s1051_s30 = smov [#allocation2 + $0x2]   ;;  %s96_s28 = int_to_ptr.vmem [resolvable:$true] %s1103_s28 }
  0x10   :  { %s1108_s5 = sshll.u32 %s1051_s30, 4  ;;  %s1110_s6 = sld [smem:[#allocation5 + $0x3]]  ;;  %s112_s5 = int_to_ptr.vmem [resolvable:$true] %s1108_s5 }
  0x11   :  { %s1052_s10 = smov [#allocation2 + $0x3]   ;;  %s1124_s20 = scalar_lea.hbm %s1282_s2, 32 }
  0x12   :  { %s69_s9 = scalar_lea.hbm %s1282_s2, %s38_s0  ;;  %s1116_s11 = sshll.u32 %s1052_s10, 4  ;;  %s128_s11 = int_to_ptr.vmem [resolvable:$true] %s1116_s11 }
  0x13   :  { %s77_s12 = sshll.u32 %s69_s9, 4  ;;  %s83_s15 = scalar_lea.hbm %s1282_s2, %s511_s27  ;;  %s78_s12 = int_to_ptr.hbm [resolvable:$true] %s77_s12 }
  0x14   :  { %s93_s16 = sshll.u32 %s83_s15, 4  ;;  %s599_s17 = sshra.s32 %s78_s12, 4  ;;  %s600_s17 = int_to_ptr.hbm [resolvable:$true] %s599_s17  ;;  %s94_s16 = int_to_ptr.hbm [resolvable:$true] %s93_s16 }
  0x15   :  { %s601_s18 = scalar_lea.hbm %s600_s17, 1  ;;  %p604_p1 = scmp.lt.s32.totalorder %s600_s17, %s1282_s2 }
  0x16   :  { %p602_p0 = scmp.ne.s32.totalorder %s600_s17, %s601_s18  ;;  %p605_p2 = scmp.lt.s32.totalorder %s1124_s20, %s601_s18 }
  0x18   :  { %p606_p3 = por %p605_p2, %p604_p1 }
  0x1a   :  { %p607_p4 = pnand %p606_p3, %p602_p0 }
  0x1c   :  { %610 = shalt.err (!%p607_p4)  }
  0x1d   :  { %82 = dma.hbm_to_vmem [thread:$0]  %s78_s12, 16, %s80_s26, [#allocation3] }
  0x1e   :  { %s99_s27 = scalar_lea.hbm %s1282_s2, %s1105_s29  ;;  %s623_s3 = sshra.s32 %s94_s16, 4  ;;  %s624_s3 = int_to_ptr.hbm [resolvable:$true] %s623_s3 }
  0x1f   :  { %s625_s30 = scalar_lea.hbm %s624_s3, 1  ;;  %p628_p6 = scmp.lt.s32.totalorder %s624_s3, %s1282_s2 }
  0x20   :  { %p626_p5 = scmp.ne.s32.totalorder %s624_s3, %s625_s30  ;;  %p629_p7 = scmp.lt.s32.totalorder %s1124_s20, %s625_s30 }
  0x22   :  { %p630_p8 = por %p629_p7, %p628_p6 }
  0x24   :  { %p631_p9 = pnand %p630_p8, %p626_p5 }
  0x26   :  { %634 = shalt.err (!%p631_p9)  }
  0x27   :  { %98 = dma.hbm_to_vmem [thread:$0]  %s94_s16, 16, %s96_s28, [#allocation3 + $0x1] }
  0x28   :  { %s109_s26 = sshll.u32 %s99_s27, 4  ;;  %s115_s10 = scalar_lea.hbm %s1282_s2, %s1110_s6  ;;  %s110_s26 = int_to_ptr.hbm [resolvable:$true] %s109_s26 }
  0x29   :  { %s125_s12 = sshll.u32 %s115_s10, 4  ;;  %s647_s13 = sshra.s32 %s110_s26, 4  ;;  %s648_s13 = int_to_ptr.hbm [resolvable:$true] %s647_s13  ;;  %s126_s12 = int_to_ptr.hbm [resolvable:$true] %s125_s12 }
  0x2a   :  { %s649_s14 = scalar_lea.hbm %s648_s13, 1  ;;  %p652_p11 = scmp.lt.s32.totalorder %s648_s13, %s1282_s2 }
  0x2b   :  { %p650_p10 = scmp.ne.s32.totalorder %s648_s13, %s649_s14  ;;  %p653_p12 = scmp.lt.s32.totalorder %s1124_s20, %s649_s14 }
  0x2d   :  { %p654_p13 = por %p653_p12, %p652_p11 }
  0x2f   :  { %p655_p0 = pnand %p654_p13, %p650_p10 }
  0x31   :  { %658 = shalt.err (!%p655_p0)  }
  0x32   :  { %114 = dma.hbm_to_vmem [thread:$0]  %s110_s26, 16, %s112_s5, [#allocation3 + $0x2] }
  0x33   :  { %s671_s28 = sshra.s32 %s126_s12, 4  ;;  %s672_s28 = int_to_ptr.hbm [resolvable:$true] %s671_s28 }
  0x34   :  { %s673_s6 = scalar_lea.hbm %s672_s28, 1  ;;  %p676_p2 = scmp.lt.s32.totalorder %s672_s28, %s1282_s2 }
  0x35   :  { %p674_p1 = scmp.ne.s32.totalorder %s672_s28, %s673_s6  ;;  %p677_p3 = scmp.lt.s32.totalorder %s1124_s20, %s673_s6 }
  0x37   :  { %p678_p4 = por %p677_p3, %p676_p2 }
  0x39   :  { %p679_p5 = pnand %p678_p4, %p674_p1 }
  0x3b   :  { %682 = shalt.err (!%p679_p5)  }
  0x3c   :  { %130 = dma.hbm_to_vmem [thread:$0]  %s126_s12, 16, %s128_s11, [#allocation3 + $0x3] }
  0x3d   :  { %s514_s1 = sld [smem:[#allocation5 + $0x4]]  ;;  %s1053_s19 = smov [#allocation2 + $0x4]  }
  0x3e   :  { %s143_s21 = sshll.u32 %s1053_s19, 4  ;;  %s515_s22 = sld [smem:[#allocation5 + $0x5]]  ;;  %s144_s21 = int_to_ptr.vmem [resolvable:$true] %s143_s21 }
  0x3f   :  { %s1054_s5 = smov [#allocation2 + $0x5]   ;;  %s1157_s25 = sld [smem:[#allocation5 + $0x6]] }
  0x40   :  { %s1155_s0 = sshll.u32 %s1054_s5, 4  ;;  %s1055_s27 = smov [#allocation2 + $0x6]   ;;  %s160_s0 = int_to_ptr.vmem [resolvable:$true] %s1155_s0 }
  0x41   :  { %s1160_s3 = sshll.u32 %s1055_s27, 4  ;;  %s1162_s30 = sld [smem:[#allocation5 + $0x7]]  ;;  %s176_s3 = int_to_ptr.vmem [resolvable:$true] %s1160_s3 }
  0x43   :  { %s131_s8 = scalar_lea.hbm %s1282_s2, %s514_s1 }
  0x44   :  { %s141_s26 = sshll.u32 %s131_s8, 4  ;;  %s147_s10 = scalar_lea.hbm %s1282_s2, %s515_s22  ;;  %s142_s26 = int_to_ptr.hbm [resolvable:$true] %s141_s26 }
  0x45   :  { %s157_s12 = sshll.u32 %s147_s10, 4  ;;  %s695_s13 = sshra.s32 %s142_s26, 4  ;;  %s696_s13 = int_to_ptr.hbm [resolvable:$true] %s695_s13  ;;  %s158_s12 = int_to_ptr.hbm [resolvable:$true] %s157_s12 }
  0x46   :  { %s697_s14 = scalar_lea.hbm %s696_s13, 1  ;;  %p700_p7 = scmp.lt.s32.totalorder %s696_s13, %s1282_s2 }
  0x47   :  { %p698_p6 = scmp.ne.s32.totalorder %s696_s13, %s697_s14  ;;  %p701_p8 = scmp.lt.s32.totalorder %s1124_s20, %s697_s14 }
  0x49   :  { %p702_p9 = por %p701_p8, %p700_p7 }
  0x4b   :  { %p703_p10 = pnand %p702_p9, %p698_p6 }
  0x4d   :  { %706 = shalt.err (!%p703_p10)  }
  0x4e   :  { %146 = dma.hbm_to_vmem [thread:$0]  %s142_s26, 16, %s144_s21, [#allocation3 + $0x4] }
  0x4f   :  { %s163_s16 = scalar_lea.hbm %s1282_s2, %s1157_s25  ;;  %s719_s18 = sshra.s32 %s158_s12, 4  ;;  %s720_s18 = int_to_ptr.hbm [resolvable:$true] %s719_s18 }
  0x50   :  { %s721_s1 = scalar_lea.hbm %s720_s18, 1  ;;  %p724_p12 = scmp.lt.s32.totalorder %s720_s18, %s1282_s2 }
  0x51   :  { %p722_p11 = scmp.ne.s32.totalorder %s720_s18, %s721_s1  ;;  %p725_p13 = scmp.lt.s32.totalorder %s1124_s20, %s721_s1 }
  0x53   :  { %p726_p0 = por %p725_p13, %p724_p12 }
  0x55   :  { %p727_p1 = pnand %p726_p0, %p722_p11 }
  0x57   :  { %730 = shalt.err (!%p727_p1)  }
  0x58   :  { %162 = dma.hbm_to_vmem [thread:$0]  %s158_s12, 16, %s160_s0, [#allocation3 + $0x5] }
  0x59   :  { %s173_s21 = sshll.u32 %s163_s16, 4  ;;  %s179_s27 = scalar_lea.hbm %s1282_s2, %s1162_s30  ;;  %s174_s21 = int_to_ptr.hbm [resolvable:$true] %s173_s21 }
  0x5a   :  { %s189_s11 = sshll.u32 %s179_s27, 4  ;;  %s743_s7 = sshra.s32 %s174_s21, 4  ;;  %s744_s7 = int_to_ptr.hbm [resolvable:$true] %s743_s7  ;;  %s190_s11 = int_to_ptr.hbm [resolvable:$true] %s189_s11 }
  0x5b   :  { %s745_s8 = scalar_lea.hbm %s744_s7, 1  ;;  %p748_p3 = scmp.lt.s32.totalorder %s744_s7, %s1282_s2 }
  0x5c   :  { %p746_p2 = scmp.ne.s32.totalorder %s744_s7, %s745_s8  ;;  %p749_p4 = scmp.lt.s32.totalorder %s1124_s20, %s745_s8 }
  0x5e   :  { %p750_p5 = por %p749_p4, %p748_p3 }
  0x60   :  { %p751_p6 = pnand %p750_p5, %p746_p2 }
  0x62   :  { %754 = shalt.err (!%p751_p6)  }
  0x63   :  { %178 = dma.hbm_to_vmem [thread:$0]  %s174_s21, 16, %s176_s3, [#allocation3 + $0x6] }
  0x64   :  { %s1056_s0 = smov [#allocation2 + $0x7]   ;;  %s518_s29 = sld [smem:[#allocation5 + $0x8]] }
  0x65   :  { %s191_s30 = sshll.u32 %s1056_s0, 4  ;;  %s767_s10 = sshra.s32 %s190_s11, 4  ;;  %s192_s30 = int_to_ptr.vmem [resolvable:$true] %s191_s30  ;;  %s768_s10 = int_to_ptr.hbm [resolvable:$true] %s767_s10 }
  0x66   :  { %s769_s12 = scalar_lea.hbm %s768_s10, 1  ;;  %p772_p8 = scmp.lt.s32.totalorder %s768_s10, %s1282_s2 }
  0x67   :  { %p770_p7 = scmp.ne.s32.totalorder %s768_s10, %s769_s12  ;;  %p773_p9 = scmp.lt.s32.totalorder %s1124_s20, %s769_s12 }
  0x69   :  { %p774_p10 = por %p773_p9, %p772_p8 }
  0x6b   :  { %p775_p11 = pnand %p774_p10, %p770_p7 }
  0x6d   :  { %778 = shalt.err (!%p775_p11)  }
  0x6e   :  { %194 = dma.hbm_to_vmem [thread:$0]  %s190_s11, 16, %s192_s30, [#allocation3 + $0x7] }
  0x6f   :  { %s1057_s15 = smov [#allocation2 + $0x8]   ;;  %s519_s17 = sld [smem:[#allocation5 + $0x9]] }
  0x70   :  { %s207_s3 = sshll.u32 %s1057_s15, 4  ;;  %s1058_s28 = smov [#allocation2 + $0x9]   ;;  %s208_s3 = int_to_ptr.vmem [resolvable:$true] %s207_s3 }
  0x71   :  { %s1199_s6 = sshll.u32 %s1058_s28, 4  ;;  %s520_s16 = sld [smem:[#allocation5 + $0xa]]  ;;  %s224_s6 = int_to_ptr.vmem [resolvable:$true] %s1199_s6 }
  0x72   :  { %s195_s19 = scalar_lea.hbm %s1282_s2, %s518_s29  ;;  %s1059_s21 = smov [#allocation2 + $0xa]  }
  0x73   :  { %s205_s22 = sshll.u32 %s195_s19, 4  ;;  %s1205_s5 = sshll.u32 %s1059_s21, 4  ;;  %s206_s22 = int_to_ptr.hbm [resolvable:$true] %s205_s22  ;;  %s240_s5 = int_to_ptr.vmem [resolvable:$true] %s1205_s5 }
  0x74   :  { %s791_s25 = sshra.s32 %s206_s22, 4  ;;  %s792_s25 = int_to_ptr.hbm [resolvable:$true] %s791_s25 }
  0x75   :  { %s793_s27 = scalar_lea.hbm %s792_s25, 1  ;;  %p796_p13 = scmp.lt.s32.totalorder %s792_s25, %s1282_s2 }
  0x76   :  { %p794_p12 = scmp.ne.s32.totalorder %s792_s25, %s793_s27  ;;  %p797_p0 = scmp.lt.s32.totalorder %s1124_s20, %s793_s27 }
  0x78   :  { %p798_p1 = por %p797_p0, %p796_p13 }
  0x7a   :  { %p799_p2 = pnand %p798_p1, %p794_p12 }
  0x7c   :  { %802 = shalt.err (!%p799_p2)  }
  0x7d   :  { %210 = dma.hbm_to_vmem [thread:$0]  %s206_s22, 16, %s208_s3, [#allocation3 + $0x8] }
  0x7e   :  { %s211_s9 = scalar_lea.hbm %s1282_s2, %s519_s17  ;;  %s227_s10 = scalar_lea.hbm %s1282_s2, %s520_s16 }
  0x7f   :  { %s221_s0 = sshll.u32 %s211_s9, 4  ;;  %s237_s12 = sshll.u32 %s227_s10, 4  ;;  %s222_s0 = int_to_ptr.hbm [resolvable:$true] %s221_s0  ;;  %s238_s12 = int_to_ptr.hbm [resolvable:$true] %s237_s12 }
  0x80   :  { %s815_s13 = sshra.s32 %s222_s0, 4  ;;  %s816_s13 = int_to_ptr.hbm [resolvable:$true] %s815_s13 }
  0x81   :  { %s817_s14 = scalar_lea.hbm %s816_s13, 1  ;;  %p820_p4 = scmp.lt.s32.totalorder %s816_s13, %s1282_s2 }
  0x82   :  { %p818_p3 = scmp.ne.s32.totalorder %s816_s13, %s817_s14  ;;  %p821_p5 = scmp.lt.s32.totalorder %s1124_s20, %s817_s14 }
  0x84   :  { %p822_p6 = por %p821_p5, %p820_p4 }
  0x86   :  { %p823_p7 = pnand %p822_p6, %p818_p3 }
  0x88   :  { %826 = shalt.err (!%p823_p7)  }
  0x89   :  { %226 = dma.hbm_to_vmem [thread:$0]  %s222_s0, 16, %s224_s6, [#allocation3 + $0x9] }
  0x8a   :  { %s521_s17 = sld [smem:[#allocation5 + $0xb]]  ;;  %s839_s28 = sshra.s32 %s238_s12, 4  ;;  %s840_s28 = int_to_ptr.hbm [resolvable:$true] %s839_s28 }
  0x8b   :  { %s841_s16 = scalar_lea.hbm %s840_s28, 1  ;;  %p844_p9 = scmp.lt.s32.totalorder %s840_s28, %s1282_s2 }
  0x8c   :  { %p842_p8 = scmp.ne.s32.totalorder %s840_s28, %s841_s16  ;;  %p845_p10 = scmp.lt.s32.totalorder %s1124_s20, %s841_s16 }
  0x8e   :  { %p846_p11 = por %p845_p10, %p844_p9 }
  0x90   :  { %p847_p12 = pnand %p846_p11, %p842_p8 }
  0x92   :  { %850 = shalt.err (!%p847_p12)  }
  0x93   :  { %242 = dma.hbm_to_vmem [thread:$0]  %s238_s12, 16, %s240_s5, [#allocation3 + $0xa] }
  0x94   :  { %s522_s19 = sld [smem:[#allocation5 + $0xc]]  ;;  %s1060_s22 = smov [#allocation2 + $0xb]  }
  0x95   :  { %s255_s21 = sshll.u32 %s1060_s22, 4  ;;  %s1061_s6 = smov [#allocation2 + $0xc]   ;;  %s256_s21 = int_to_ptr.vmem [resolvable:$true] %s255_s21 }
  0x96   :  { %s1228_s25 = sshll.u32 %s1061_s6, 4  ;;  %s1231_s27 = sld [smem:[#allocation5 + $0xd]]  ;;  %s272_s25 = int_to_ptr.vmem [resolvable:$true] %s1228_s25 }
  0x97   :  { %s243_s8 = scalar_lea.hbm %s1282_s2, %s521_s17  ;;  %s1062_s9 = smov [#allocation2 + $0xd]  }
  0x98   :  { %s253_s26 = sshll.u32 %s243_s8, 4  ;;  %s1236_s0 = sshll.u32 %s1062_s9, 4  ;;  %s254_s26 = int_to_ptr.hbm [resolvable:$true] %s253_s26  ;;  %s288_s0 = int_to_ptr.vmem [resolvable:$true] %s1236_s0 }
  0x99   :  { %s863_s10 = sshra.s32 %s254_s26, 4  ;;  %s864_s10 = int_to_ptr.hbm [resolvable:$true] %s863_s10 }
  0x9a   :  { %s259_s29 = scalar_lea.hbm %s1282_s2, %s522_s19  ;;  %s865_s12 = scalar_lea.hbm %s864_s10, 1 }
  0x9b   :  { %p866_p13 = scmp.ne.s32.totalorder %s864_s10, %s865_s12  ;;  %p868_p0 = scmp.lt.s32.totalorder %s864_s10, %s1282_s2 }
  0x9c   :  { %p869_p1 = scmp.lt.s32.totalorder %s1124_s20, %s865_s12 }
  0x9e   :  { %p870_p2 = por %p869_p1, %p868_p0 }
  0xa0   :  { %p871_p3 = pnand %p870_p2, %p866_p13 }
  0xa2   :  { %874 = shalt.err (!%p871_p3)  }
  0xa3   :  { %258 = dma.hbm_to_vmem [thread:$0]  %s254_s26, 16, %s256_s21, [#allocation3 + $0xb] }
  0xa4   :  { %s269_s15 = sshll.u32 %s259_s29, 4  ;;  %s275_s28 = scalar_lea.hbm %s1282_s2, %s1231_s27  ;;  %s270_s15 = int_to_ptr.hbm [resolvable:$true] %s269_s15 }
  0xa5   :  { %s887_s16 = sshra.s32 %s270_s15, 4  ;;  %s888_s16 = int_to_ptr.hbm [resolvable:$true] %s887_s16 }
  0xa6   :  { %s889_s18 = scalar_lea.hbm %s888_s16, 1  ;;  %p892_p5 = scmp.lt.s32.totalorder %s888_s16, %s1282_s2 }
  0xa7   :  { %p890_p4 = scmp.ne.s32.totalorder %s888_s16, %s889_s18  ;;  %p893_p6 = scmp.lt.s32.totalorder %s1124_s20, %s889_s18 }
  0xa9   :  { %p894_p7 = por %p893_p6, %p892_p5 }
  0xab   :  { %p895_p8 = pnand %p894_p7, %p890_p4 }
  0xad   :  { %898 = shalt.err (!%p895_p8)  }
  0xae   :  { %274 = dma.hbm_to_vmem [thread:$0]  %s270_s15, 16, %s272_s25, [#allocation3 + $0xc] }
  0xaf   :  { %s285_s22 = sshll.u32 %s275_s28, 4  ;;  %s524_s21 = sld [smem:[#allocation5 + $0xe]]  ;;  %s286_s22 = int_to_ptr.hbm [resolvable:$true] %s285_s22 }
  0xb0   :  { %s911_s6 = sshra.s32 %s286_s22, 4  ;;  %s912_s6 = int_to_ptr.hbm [resolvable:$true] %s911_s6 }
  0xb1   :  { %s913_s27 = scalar_lea.hbm %s912_s6, 1  ;;  %p916_p10 = scmp.lt.s32.totalorder %s912_s6, %s1282_s2 }
  0xb2   :  { %p914_p9 = scmp.ne.s32.totalorder %s912_s6, %s913_s27  ;;  %p917_p11 = scmp.lt.s32.totalorder %s1124_s20, %s913_s27 }
  0xb4   :  { %p918_p12 = por %p917_p11, %p916_p10 }
  0xb6   :  { %p919_p13 = pnand %p918_p12, %p914_p9 }
  0xb8   :  { %922 = shalt.err (!%p919_p13)  }
  0xb9   :  { %290 = dma.hbm_to_vmem [thread:$0]  %s286_s22, 16, %s288_s0, [#allocation3 + $0xd] }
  0xba   :  { %s1063_s8 = smov [#allocation2 + $0xe]   ;;  %s525_s25 = sld [smem:[#allocation5 + $0xf]] }
  0xbb   :  { %s303_s26 = sshll.u32 %s1063_s8, 4  ;;  %s291_s30 = scalar_lea.hbm %s1282_s2, %s524_s21  ;;  %s304_s26 = int_to_ptr.vmem [resolvable:$true] %s303_s26 }
  0xbc   :  { %s301_s29 = sshll.u32 %s291_s30, 4  ;;  %s1064_s10 = smov [#allocation2 + $0xf]   ;;  %s302_s29 = int_to_ptr.hbm [resolvable:$true] %s301_s29 }
  0xbd   :  { %s319_s12 = sshll.u32 %s1064_s10, 4  ;;  %s935_s13 = sshra.s32 %s302_s29, 4  ;;  %s936_s13 = int_to_ptr.hbm [resolvable:$true] %s935_s13  ;;  %s320_s12 = int_to_ptr.vmem [resolvable:$true] %s319_s12 }
  0xbe   :  { %s937_s14 = scalar_lea.hbm %s936_s13, 1  ;;  %p940_p1 = scmp.lt.s32.totalorder %s936_s13, %s1282_s2 }
  0xbf   :  { %p938_p0 = scmp.ne.s32.totalorder %s936_s13, %s937_s14  ;;  %p941_p2 = scmp.lt.s32.totalorder %s1124_s20, %s937_s14 }
  0xc1   :  { %p942_p3 = por %p941_p2, %p940_p1 }
  0xc3   :  { %p943_p4 = pnand %p942_p3, %p938_p0 }
  0xc5   :  { %946 = shalt.err (!%p943_p4)  }
  0xc6   :  { %306 = dma.hbm_to_vmem [thread:$0]  %s302_s29, 16, %s304_s26, [#allocation3 + $0xe] }
  0xc7   :  { %s307_s28 = scalar_lea.hbm %s1282_s2, %s525_s25 }
  0xc8   :  { %s317_s16 = sshll.u32 %s307_s28, 4  ;;  %s318_s16 = int_to_ptr.hbm [resolvable:$true] %s317_s16 }
  0xc9   :  { %s959_s18 = sshra.s32 %s318_s16, 4  ;;  %s960_s18 = int_to_ptr.hbm [resolvable:$true] %s959_s18 }
  0xca   :  { %s961_s1 = scalar_lea.hbm %s960_s18, 1  ;;  %p964_p6 = scmp.lt.s32.totalorder %s960_s18, %s1282_s2 }
  0xcb   :  { %p962_p5 = scmp.ne.s32.totalorder %s960_s18, %s961_s1  ;;  %p965_p7 = scmp.lt.s32.totalorder %s1124_s20, %s961_s1 }
  0xcd   :  { %p966_p8 = por %p965_p7, %p964_p6 }
  0xcf   :  { %p967_p9 = pnand %p966_p8, %p962_p5 }
  0xd1   :  { %970 = shalt.err (!%p967_p9)  }
  0xd2   :  { %322 = dma.hbm_to_vmem [thread:$0]  %s318_s16, 16, %s320_s12, [#allocation3 + $0xf] }
  0xd3   :  { %1011 = dma.done.wait [#allocation3], 16 }
  0xd4   :  { %1012 = vsyncadd [#allocation3], 4294967280 }
  0xd5   :  { %1013 = dma.done.wait [#allocation3 + $0x1], 16 }
  0xd6   :  { %1014 = vsyncadd [#allocation3 + $0x1], 4294967280 }
  0xd7   :  { %1015 = dma.done.wait [#allocation3 + $0x2], 16 }
  0xd8   :  { %1016 = vsyncadd [#allocation3 + $0x2], 4294967280 }
  0xd9   :  { %1017 = dma.done.wait [#allocation3 + $0x3], 16 }
  0xda   :  { %1018 = vsyncadd [#allocation3 + $0x3], 4294967280 }
  0xdb   :  { %1019 = dma.done.wait [#allocation3 + $0x4], 16 }
  0xdc   :  { %1020 = vsyncadd [#allocation3 + $0x4], 4294967280 }
  0xdd   :  { %1021 = dma.done.wait [#allocation3 + $0x5], 16 }
  0xde   :  { %1022 = vsyncadd [#allocation3 + $0x5], 4294967280 }
  0xdf   :  { %1023 = dma.done.wait [#allocation3 + $0x6], 16 }
  0xe0   :  { %1024 = vsyncadd [#allocation3 + $0x6], 4294967280 }
  0xe1   :  { %1025 = dma.done.wait [#allocation3 + $0x7], 16 }
  0xe2   :  { %1026 = vsyncadd [#allocation3 + $0x7], 4294967280 }
  0xe3   :  { %1027 = dma.done.wait [#allocation3 + $0x8], 16 }
  0xe4   :  { %1028 = vsyncadd [#allocation3 + $0x8], 4294967280 }
  0xe5   :  { %1029 = dma.done.wait [#allocation3 + $0x9], 16 }
  0xe6   :  { %1030 = vsyncadd [#allocation3 + $0x9], 4294967280 }
  0xe7   :  { %1031 = dma.done.wait [#allocation3 + $0xa], 16 }
  0xe8   :  { %1032 = vsyncadd [#allocation3 + $0xa], 4294967280 }
  0xe9   :  { %1033 = dma.done.wait [#allocation3 + $0xb], 16 }
  0xea   :  { %1034 = vsyncadd [#allocation3 + $0xb], 4294967280 }
  0xeb   :  { %1035 = dma.done.wait [#allocation3 + $0xc], 16 }
  0xec   :  { %1036 = vsyncadd [#allocation3 + $0xc], 4294967280 }
  0xed   :  { %1037 = dma.done.wait [#allocation3 + $0xd], 16 }
  0xee   :  { %1038 = vsyncadd [#allocation3 + $0xd], 4294967280 }
  0xef   :  { %1039 = dma.done.wait [#allocation3 + $0xe], 16 }
  0xf0   :  { %1040 = vsyncadd [#allocation3 + $0xe], 4294967280 }
  0xf1   :  { %1041 = dma.done.wait [#allocation3 + $0xf], 16 }
  0xf2   :  { %1042 = vsyncadd [#allocation3 + $0xf], 4294967280  ;;  %s1065_s2 = smov [#allocation10]   ;;  %s371_s27 = sshll.u32 %s1284_s4, 4  ;;  %v356_v0 = vld [vmem:[#allocation2] sm:$0xff]  ;;  %v358_v1 = vld [vmem:[#allocation7] sm:$0xff]  ;;  %s372_s27 = int_to_ptr.hbm [resolvable:$true] %s371_s27 }
  0xf3   :  { %s369_s20 = sshll.u32 %s1065_s2, 4  ;;  %vm362_vm0 = vcmask 261120   ;;  %v357_v2 = vld [vmem:[#allocation2 + $0x8] sm:$0xff]  ;;  %v360_v3 = vadd.f32 %v358_v1, %v356_v0  ;;  %v359_v4 = vld [vmem:[#allocation7 + $0x8] sm:$0xff]  ;;  %s370_s20 = int_to_ptr.vmem [resolvable:$true] %s369_s20 }
  0xf4   :  { %v361_v5 = vadd.f32 %v359_v4, %v357_v2 }
  0xf5   :  { %363 = vst.msk [vmem:[#allocation10] sm:$0xff] %vm362_vm0, %v360_v3 }
  0xf6   :  { %364 = vst.msk [vmem:[#allocation10 + $0x8] sm:$0xff] %vm362_vm0, %v361_v5 }
  0xf7   :  { %377 = dma.vmem_to_hbm [thread:$0]  %s370_s20, 256, %s372_s27, [#allocation9], %s1047_s23, %s1047_s23, %s1048_s24  }
  0xf8   :  { %1043 = dma.done.wait [#allocation9], 256  }
  0xf9   :  { %1044 = vsyncadd [#allocation9], 4294967040 }
  0xfa   :  { %382 = vsyncpa [#allocation8], 1 }
  0xfb   :  { %383 = vsyncpa [#allocation9], 1 }
  0xfc   :  { %384 = vsyncmov [#allocation3] }
  0xff   :  { %s385_s4 = vpop.sfrf %384 }
 0x100   :  { %p526_p10 = scmp.ne.s32.totalorder %s385_s4, 0 }
 0x102   :  { %389 = shalt.err (%p526_p10)  }
 0x103   :  { %391 = vsyncmov [#allocation3 + $0x1] }
 0x106   :  { %s392_s11 = vpop.sfrf %391 }
 0x107   :  { %p527_p11 = scmp.ne.s32.totalorder %s392_s11, 0 }
 0x109   :  { %396 = shalt.err (%p527_p11)  }
 0x10a   :  { %398 = vsyncmov [#allocation3 + $0x2] }
 0x10d   :  { %s399_s7 = vpop.sfrf %398 }
 0x10e   :  { %p528_p12 = scmp.ne.s32.totalorder %s399_s7, 0 }
 0x110   :  { %403 = shalt.err (%p528_p12)  }
 0x111   :  { %405 = vsyncmov [#allocation3 + $0x3] }
 0x114   :  { %s406_s8 = vpop.sfrf %405 }
 0x115   :  { %p529_p13 = scmp.ne.s32.totalorder %s406_s8, 0 }
 0x117   :  { %410 = shalt.err (%p529_p13)  }
 0x118   :  { %412 = vsyncmov [#allocation3 + $0x4] }
 0x11b   :  { %s413_s23 = vpop.sfrf %412 }
 0x11c   :  { %p530_p0 = scmp.ne.s32.totalorder %s413_s23, 0 }
 0x11e   :  { %417 = shalt.err (%p530_p0)  }
 0x11f   :  { %419 = vsyncmov [#allocation3 + $0x5] }
 0x122   :  { %s420_s24 = vpop.sfrf %419 }
 0x123   :  { %p531_p1 = scmp.ne.s32.totalorder %s420_s24, 0 }
 0x125   :  { %424 = shalt.err (%p531_p1)  }
 0x126   :  { %426 = vsyncmov [#allocation3 + $0x6] }
 0x129   :  { %s427_s26 = vpop.sfrf %426 }
 0x12a   :  { %p532_p2 = scmp.ne.s32.totalorder %s427_s26, 0 }
 0x12c   :  { %431 = shalt.err (%p532_p2)  }
 0x12d   :  { %433 = vsyncmov [#allocation3 + $0x7] }
 0x130   :  { %s434_s25 = vpop.sfrf %433 }
 0x131   :  { %p533_p3 = scmp.ne.s32.totalorder %s434_s25, 0 }
 0x133   :  { %438 = shalt.err (%p533_p3)  }
 0x134   :  { %440 = vsyncmov [#allocation3 + $0x8] }
 0x137   :  { %s441_s9 = vpop.sfrf %440 }
 0x138   :  { %p534_p4 = scmp.ne.s32.totalorder %s441_s9, 0 }
 0x13a   :  { %445 = shalt.err (%p534_p4)  }
 0x13b   :  { %447 = vsyncmov [#allocation3 + $0x9] }
 0x13e   :  { %s448_s5 = vpop.sfrf %447 }
 0x13f   :  { %p535_p5 = scmp.ne.s32.totalorder %s448_s5, 0 }
 0x141   :  { %452 = shalt.err (%p535_p5)  }
 0x142   :  { %454 = vsyncmov [#allocation3 + $0xa] }
 0x145   :  { %s455_s30 = vpop.sfrf %454 }
 0x146   :  { %p536_p6 = scmp.ne.s32.totalorder %s455_s30, 0 }
 0x148   :  { %459 = shalt.err (%p536_p6)  }
 0x149   :  { %461 = vsyncmov [#allocation3 + $0xb] }
 0x14c   :  { %s462_s29 = vpop.sfrf %461 }
 0x14d   :  { %p537_p7 = scmp.ne.s32.totalorder %s462_s29, 0 }
 0x14f   :  { %466 = shalt.err (%p537_p7)  }
 0x150   :  { %468 = vsyncmov [#allocation3 + $0xc] }
 0x153   :  { %s469_s10 = vpop.sfrf %468 }
 0x154   :  { %p538_p8 = scmp.ne.s32.totalorder %s469_s10, 0 }
 0x156   :  { %473 = shalt.err (%p538_p8)  }
 0x157   :  { %475 = vsyncmov [#allocation3 + $0xd] }
 0x15a   :  { %s476_s12 = vpop.sfrf %475 }
 0x15b   :  { %p539_p9 = scmp.ne.s32.totalorder %s476_s12, 0 }
 0x15d   :  { %480 = shalt.err (%p539_p9)  }
 0x15e   :  { %482 = vsyncmov [#allocation3 + $0xe] }
 0x161   :  { %s483_s13 = vpop.sfrf %482 }
 0x162   :  { %p540_p10 = scmp.ne.s32.totalorder %s483_s13, 0 }
 0x164   :  { %487 = shalt.err (%p540_p10)  }
 0x165   :  { %489 = vsyncmov [#allocation3 + $0xf] }
 0x168   :  { %s490_s14 = vpop.sfrf %489 }
 0x169   :  { %p541_p11 = scmp.ne.s32.totalorder %s490_s14, 0 }
 0x16b   :  { %494 = shalt.err (%p541_p11)  }

</bundles_post_ra>
